<compile_context>
chip_gen: v6e
topology: v6e:2x2x1
jax: 0.10.0
libtpu: 0.0.40
codegen_flags: <defaults>
</compile_context>

<pallas_src>
import jax
import jax.numpy as jnp
import numpy as np
from jax.experimental import pallas as pl
from jax.experimental.pallas import tpu as pltpu

NEG_SLOPE = 0.43
STRIDE = 3
PADDING = 1
KH = KW = 3
CIN = 480
COUT = 9
NCOL = KH * KW * COUT      # 81 logical output columns
NCOL_PAD = 128             # pad column axis to a full lane width


def convt_mm_kernel(x_ref, w_ref, b_ref, o_ref):
    # x_ref: (TM, Cin)  w_ref: (Cin, 128)  b_ref: (1, 128)  o_ref: (TM, 128)
    y = jnp.dot(x_ref[...], w_ref[...], preferred_element_type=jnp.float32)
    y = y + b_ref[...]
    # fused LeakyReLU: where(y > 0, y, y * negative_slope)
    o_ref[...] = jnp.where(y > 0, y, y * NEG_SLOPE)


def _round_up(x, m):
    return ((x + m - 1) // m) * m


def conv_transpose_leaky(x_nchw, weight, bias, *, tm=1024):
    """x_nchw: (N, 480, H, W) f32; weight: (480, 9, 3, 3); bias: (9,)."""
    N, Cin, H, W = x_nchw.shape
    _, Cout, kh, kw = weight.shape
    assert Cin == CIN and Cout == COUT and kh == KH and kw == KW
    assert STRIDE == KH  # no-overlap property relied on below

    # LHS: NCHW -> NHWC -> (M, Cin)
    x_flat = jnp.transpose(x_nchw, (0, 2, 3, 1)).reshape(N * H * W, Cin)
    M, K = x_flat.shape

    # Pick a tile size and pad M up to a multiple of it (zero rows, dropped
    # after the kernel).  TM is kept a multiple of 8 (sublane granularity).
    TM = min(tm, _round_up(M, 8))
    M_pad = _round_up(M, TM)
    if M_pad != M:
        x_flat = jnp.pad(x_flat, ((0, M_pad - M), (0, 0)))

    # RHS: (Cin, Cout, KH, KW) -> (Cin, KH, KW, Cout) -> (Cin, 81) -> pad to 128
    w_mat = jnp.transpose(weight, (0, 2, 3, 1)).reshape(Cin, NCOL)
    w_mat = jnp.pad(w_mat, ((0, 0), (0, NCOL_PAD - NCOL)))
    # bias broadcast per tap (cout innermost), padded to 128 lanes
    b_row = jnp.tile(bias, KH * KW).reshape(1, NCOL)
    b_row = jnp.pad(b_row, ((0, 0), (0, NCOL_PAD - NCOL)))

    grid = (M_pad // TM,)
    cost = pl.CostEstimate(
        flops=2 * M * K * NCOL,
        transcendentals=0,
        bytes_accessed=(M * K + K * NCOL + M * NCOL) * 4,
    )

    y = pl.pallas_call(
        convt_mm_kernel,
        out_shape=jax.ShapeDtypeStruct((M_pad, NCOL_PAD), jnp.float32),
        grid=grid,
        in_specs=[
            pl.BlockSpec((TM, K), lambda i: (i, 0)),          # LHS tile
            pl.BlockSpec((K, NCOL_PAD), lambda i: (0, 0)),    # resident weight
            pl.BlockSpec((1, NCOL_PAD), lambda i: (0, 0)),    # resident bias
        ],
        out_specs=pl.BlockSpec((TM, NCOL_PAD), lambda i: (i, 0)),
        compiler_params=pltpu.CompilerParams(
            dimension_semantics=("parallel",)),
        cost_estimate=cost,
    )(x_flat, w_mat, b_row)

    # Drop row/column padding, then scatter taps into the output grid:
    # oy = STRIDE*iy + kh - PADDING.  Since stride == kernel size, (iy, kh)
    # maps bijectively onto a dense 3H grid; the transposed-conv output is
    # that grid shifted by `padding` and cropped.
    y = y[:M, :NCOL]
    y6 = y.reshape(N, H, W, KH, KW, Cout)
    y6 = jnp.transpose(y6, (0, 1, 3, 2, 4, 5))        # (N, H, KH, W, KW, Cout)
    full = y6.reshape(N, H * KH, W * KW, Cout)
    Hout = (H - 1) * STRIDE - 2 * PADDING + KH
    Wout = (W - 1) * STRIDE - 2 * PADDING + KW
    out_nhwc = full[:, PADDING:PADDING + Hout, PADDING:PADDING + Wout, :]
    return jnp.transpose(out_nhwc, (0, 3, 1, 2))      # back to NCHW


def reference(x, w, b):
    """Pure-JAX reference: transposed conv via lhs-dilated conv + leaky relu."""
    w_flip = w[:, :, ::-1, ::-1]                      # flip spatially
    w_conv = jnp.transpose(w_flip, (1, 0, 2, 3))      # (Cout, Cin, KH, KW)
    pad = KH - 1 - PADDING
    y = jax.lax.conv_general_dilated(
        x, w_conv, window_strides=(1, 1),
        padding=[(pad, pad), (pad, pad)],
        lhs_dilation=(STRIDE, STRIDE),
        dimension_numbers=("NCHW", "OIHW", "NCHW"))
    y = y + b[None, :, None, None]
    return jnp.where(y > 0, y, y * NEG_SLOPE)


if __name__ == "__main__":
    key = jax.random.PRNGKey(0)
    kx, kw, kb = jax.random.split(key, 3)

    # Small shapes consistent with the module (in-channels must stay 480).
    N, H, W = 2, 8, 8
    x1 = jax.random.normal(kx, (N, CIN, H, W), dtype=jnp.float32)

    # Deterministic parameter init (ConvTranspose2d weight: (Cin, Cout, KH, KW))
    fan = COUT * KH * KW
    bound = 1.0 / np.sqrt(fan)
    weight = jax.random.uniform(kw, (CIN, COUT, KH, KW), jnp.float32,
                                -bound, bound)
    bias = jax.random.uniform(kb, (COUT,), jnp.float32, -bound, bound)

    out = conv_transpose_leaky(x1, weight, bias)
    out = jax.block_until_ready(out)

    ref = jax.block_until_ready(reference(x1, weight, bias))
    assert out.shape == (N, COUT, (H - 1) * STRIDE - 2 * PADDING + KH,
                         (W - 1) * STRIDE - 2 * PADDING + KW), out.shape
    np.testing.assert_allclose(np.asarray(out), np.asarray(ref),
                               rtol=1e-4, atol=1e-4)
    print("KERNEL_OK")
</pallas_src>

<mosaic_0001>
module attributes {stable_mosaic.version = 11 : i64} {
  func.func @convt_mm_kernel(%arg0: i32, %arg1: memref<128x480xf32, #tpu.memory_space<vmem>>, %arg2: memref<480x128xf32, #tpu.memory_space<vmem>>, %arg3: memref<1x128xf32, #tpu.memory_space<vmem>>, %arg4: memref<128x128xf32, #tpu.memory_space<vmem>>) attributes {dimension_semantics = [#tpu.dimension_semantics<parallel>], iteration_bounds = array<i64: 1>, scalar_prefetch = 0 : i64, scratch_operands = 0 : i64, tpu.core_type = #tpu.core_type<tc>, window_params = [{transform_indices = @transform_0, window_bounds = array<i64: 128, 480>}, {pipeline_mode = #tpu.pipeline_mode<synchronous>, transform_indices = @transform_1, window_bounds = array<i64: 480, 128>}, {pipeline_mode = #tpu.pipeline_mode<synchronous>, transform_indices = @transform_2, window_bounds = array<i64: 1, 128>}, {transform_indices = @transform_3, window_bounds = array<i64: 128, 128>}]} {
    %c0 = arith.constant 0 : index
    %c0_0 = arith.constant 0 : index
    %0 = vector.load %arg1[%c0, %c0_0] : memref<128x480xf32, #tpu.memory_space<vmem>>, vector<128x480xf32>
    %c0_1 = arith.constant 0 : index
    %c0_2 = arith.constant 0 : index
    %1 = vector.load %arg2[%c0_1, %c0_2] : memref<480x128xf32, #tpu.memory_space<vmem>>, vector<480x128xf32>
    %cst = arith.constant dense<0.000000e+00> : vector<128x128xf32>
    %2 = tpu.matmul %0, %1, %cst {dimension_numbers = #tpu.dot_dimension_numbers<[1], [0], [0], [1], [0, 0, 1, 1], [], []>} : vector<128x480xf32>, vector<480x128xf32>, vector<128x128xf32> -> vector<128x128xf32>
    %c0_3 = arith.constant 0 : index
    %c0_4 = arith.constant 0 : index
    %3 = vector.load %arg3[%c0_3, %c0_4] : memref<1x128xf32, #tpu.memory_space<vmem>>, vector<1x128xf32>
    %4 = vector.broadcast %3 : vector<1x128xf32> to vector<128x128xf32>
    %5 = arith.addf %2, %4 : vector<128x128xf32>
    %cst_5 = arith.constant 0.000000e+00 : f32
    %6 = vector.broadcast %cst_5 : f32 to vector<128x128xf32>
    %7 = arith.cmpf ogt, %5, %6 : vector<128x128xf32>
    %cst_6 = arith.constant 4.300000e-01 : f32
    %8 = vector.broadcast %cst_6 : f32 to vector<128x128xf32>
    %9 = arith.mulf %5, %8 : vector<128x128xf32>
    %10 = arith.select %7, %5, %9 : vector<128x128xi1>, vector<128x128xf32>
    %c0_7 = arith.constant 0 : index
    %c0_8 = arith.constant 0 : index
    %11 = vector.load %arg4[%c0_7, %c0_8] : memref<128x128xf32, #tpu.memory_space<vmem>>, vector<128x128xf32>
    tpu.vector_store %arg4[%c0_7, %c0_8], %10 {strides = array<i32>} : memref<128x128xf32, #tpu.memory_space<vmem>>, vector<128x128xf32>,
    return
  }
  func.func @transform_0(%arg0: i32) -> (i32, i32) {
    %c0_i32 = arith.constant 0 : i32
    %c0_i32_0 = arith.constant 0 : i32
    return %arg0, %c0_i32 : i32, i32
  }
  func.func @transform_1(%arg0: i32) -> (i32, i32) {
    %c0_i32 = arith.constant 0 : i32
    %c0_i32_0 = arith.constant 0 : i32
    %c0_i32_1 = arith.constant 0 : i32
    return %c0_i32, %c0_i32_0 : i32, i32
  }
  func.func @transform_2(%arg0: i32) -> (i32, i32) {
    %c0_i32 = arith.constant 0 : i32
    %c0_i32_0 = arith.constant 0 : i32
    %c0_i32_1 = arith.constant 0 : i32
    return %c0_i32, %c0_i32_0 : i32, i32
  }
  func.func @transform_3(%arg0: i32) -> (i32, i32) {
    %c0_i32 = arith.constant 0 : i32
    %c0_i32_0 = arith.constant 0 : i32
    return %arg0, %c0_i32 : i32, i32
  }
}

</mosaic_0001>

<bundles_post_ra>
// kernel: tpu_custom_call.1
= control target key start
LH: loop header
LB: loop body
LE: loop exit
PB: predicated region body
PF: predicated region fallthrough
CT: control target
= control target key end

     0   :  { %v744_v3 = vmov 0.0   ;;  %s1366_s0 = inlined_call_operand.vmem [shape: f32[128,480], index: 0, kind: input, shape index: {}]   ;;  %s1367_s1 = inlined_call_operand.vmem [shape: f32[480,128], index: 1, kind: input, shape index: {}]   ;;  %s1368_s2 = inlined_call_operand.vmem [shape: f32[1,128], index: 2, kind: input, shape index: {}]   ;;  %s1369_s3 = inlined_call_operand.hbm [shape: f32[128,128], index: 3, kind: output, shape index: {}]  }
   0x1   :  { %v110_v0 = vld [vmem:[%s1367_s1 + $0xf8] sm:$0xff]  ;;  %662 = vmatprep.subr.mxu1 %v744_v3  ;;  %v109_v4 = vld [vmem:[%s1367_s1 + $0xf0] sm:$0xff]  ;;  %v108_v7 = vld [vmem:[%s1367_s1 + $0xe8] sm:$0xff] }
   0x2   :  { %v94_v1 = vld [vmem:[%s1367_s1 + $0x78] sm:$0xff]  ;;  %582 = vmatprep.subr.mxu0 %v110_v0  ;;  %v93_v5 = vld [vmem:[%s1367_s1 + $0x70] sm:$0xff]  ;;  %v92_v8 = vld [vmem:[%s1367_s1 + $0x68] sm:$0xff] }
   0x3   :  { %v777_v2 = vld [vmem:[%s1367_s1 + $0x178] sm:$0xff]  ;;  %v789_v6 = vld [vmem:[%s1367_s1 + $0x170] sm:$0xff]  ;;  %583 = vmatpush3.msra.mxu0 %v94_v1  ;;  %v802_v9 = vld [vmem:[%s1367_s1 + $0x168] sm:$0xff] }
   0x4   :  { %690 = vmatpush1.msra.mxu1 %v777_v2  ;;  %584 = vmatprep.subr.mxu0 %v109_v4  ;;  %v107_v10 = vld [vmem:[%s1367_s1 + $0xe0] sm:$0xff]  ;;  %v106_v13 = vld [vmem:[%s1367_s1 + $0xd8] sm:$0xff]  ;;  %v105_v16 = vld [vmem:[%s1367_s1 + $0xd0] sm:$0xff] }
   0x5   :  { %663 = vmatprep.subr.mxu1 %v744_v3  ;;  %585 = vmatpush3.msra.mxu0 %v93_v5  ;;  %v91_v11 = vld [vmem:[%s1367_s1 + $0x60] sm:$0xff]  ;;  %v90_v14 = vld [vmem:[%s1367_s1 + $0x58] sm:$0xff]  ;;  %v89_v17 = vld [vmem:[%s1367_s1 + $0x50] sm:$0xff] }
   0x6   :  { %691 = vmatpush1.msra.mxu1 %v789_v6  ;;  %586 = vmatprep.subr.mxu0 %v108_v7  ;;  %v815_v12 = vld [vmem:[%s1367_s1 + $0x160] sm:$0xff]  ;;  %v828_v15 = vld [vmem:[%s1367_s1 + $0x158] sm:$0xff]  ;;  %v841_v18 = vld [vmem:[%s1367_s1 + $0x150] sm:$0xff] }
   0x7   :  { %664 = vmatprep.subr.mxu1 %v744_v3  ;;  %587 = vmatpush3.msra.mxu0 %v92_v8  ;;  %v104_v19 = vld [vmem:[%s1367_s1 + $0xc8] sm:$0xff]  ;;  %v103_v22 = vld [vmem:[%s1367_s1 + $0xc0] sm:$0xff]  ;;  %v102_v25 = vld [vmem:[%s1367_s1 + $0xb8] sm:$0xff] }
   0x8   :  { %692 = vmatpush1.msra.mxu1 %v802_v9  ;;  %588 = vmatprep.subr.mxu0 %v107_v10  ;;  %v88_v20 = vld [vmem:[%s1367_s1 + $0x48] sm:$0xff]  ;;  %v87_v23 = vld [vmem:[%s1367_s1 + $0x40] sm:$0xff]  ;;  %v86_v26 = vld [vmem:[%s1367_s1 + $0x38] sm:$0xff] }
   0x9   :  { %665 = vmatprep.subr.mxu1 %v744_v3  ;;  %589 = vmatpush3.msra.mxu0 %v91_v11  ;;  %v854_v21 = vld [vmem:[%s1367_s1 + $0x148] sm:$0xff]  ;;  %v867_v24 = vld [vmem:[%s1367_s1 + $0x140] sm:$0xff]  ;;  %v880_v27 = vld [vmem:[%s1367_s1 + $0x138] sm:$0xff] }
   0xa   :  { %693 = vmatpush1.msra.mxu1 %v815_v12  ;;  %590 = vmatprep.subr.mxu0 %v106_v13  ;;  %v101_v28 = vld [vmem:[%s1367_s1 + $0xb0] sm:$0xff]  ;;  %v100_v31 = vld [vmem:[%s1367_s1 + $0xa8] sm:$0xff]  ;;  %v99_v34 = vld [vmem:[%s1367_s1 + $0xa0] sm:$0xff] }
   0xb   :  { %666 = vmatprep.subr.mxu1 %v744_v3  ;;  %591 = vmatpush3.msra.mxu0 %v90_v14  ;;  %v85_v29 = vld [vmem:[%s1367_s1 + $0x30] sm:$0xff]  ;;  %v84_v32 = vld [vmem:[%s1367_s1 + $0x28] sm:$0xff]  ;;  %v83_v35 = vld [vmem:[%s1367_s1 + $0x20] sm:$0xff] }
   0xc   :  { %694 = vmatpush1.msra.mxu1 %v828_v15  ;;  %592 = vmatprep.subr.mxu0 %v105_v16  ;;  %v893_v30 = vld [vmem:[%s1367_s1 + $0x130] sm:$0xff]  ;;  %v906_v33 = vld [vmem:[%s1367_s1 + $0x128] sm:$0xff]  ;;  %v919_v36 = vld [vmem:[%s1367_s1 + $0x120] sm:$0xff] }
   0xd   :  { %667 = vmatprep.subr.mxu1 %v744_v3  ;;  %593 = vmatpush3.msra.mxu0 %v89_v17  ;;  %v98_v37 = vld [vmem:[%s1367_s1 + $0x98] sm:$0xff]  ;;  %v97_v40 = vld [vmem:[%s1367_s1 + $0x90] sm:$0xff]  ;;  %v96_v43 = vld [vmem:[%s1367_s1 + $0x88] sm:$0xff] }
   0xe   :  { %695 = vmatpush1.msra.mxu1 %v841_v18  ;;  %594 = vmatprep.subr.mxu0 %v104_v19  ;;  %v82_v38 = vld [vmem:[%s1367_s1 + $0x18] sm:$0xff]  ;;  %v81_v41 = vld [vmem:[%s1367_s1 + $0x10] sm:$0xff]  ;;  %v80_v44 = vld [vmem:[%s1367_s1 + $0x8] sm:$0xff] }
   0xf   :  { %668 = vmatprep.subr.mxu1 %v744_v3  ;;  %595 = vmatpush3.msra.mxu0 %v88_v20  ;;  %v932_v39 = vld [vmem:[%s1367_s1 + $0x118] sm:$0xff]  ;;  %v945_v42 = vld [vmem:[%s1367_s1 + $0x110] sm:$0xff]  ;;  %v958_v45 = vld [vmem:[%s1367_s1 + $0x108] sm:$0xff] }
  0x10   :  { %696 = vmatpush1.msra.mxu1 %v854_v21  ;;  %596 = vmatprep.subr.mxu0 %v103_v22  ;;  %v95_v46 = vld [vmem:[%s1367_s1 + $0x80] sm:$0xff]  ;;  %v16_v48 = vld [vmem:[%s1366_s0 + $0x8] sm:$0xff]  ;;  %v984_v51 = vld [vmem:[%s1367_s1 + $0x1d8] sm:$0xff] }
  0x11   :  { %669 = vmatprep.subr.mxu1 %v744_v3  ;;  %597 = vmatpush3.msra.mxu0 %v87_v23  ;;  %v79_v47 = vld [vmem:[%s1367_s1] sm:$0xff]  ;;  %v20_v52 = vld [vmem:[%s1366_s0 + $0x28] sm:$0xff]  ;;  %v995_v53 = vld [vmem:[%s1367_s1 + $0x1d0] sm:$0xff] }
  0x12   :  { %697 = vmatpush1.msra.mxu1 %v867_v24  ;;  %598 = vmatprep.subr.mxu0 %v102_v25  ;;  %v975_v49 = vld [vmem:[%s1367_s1 + $0x100] sm:$0xff]  ;;  %v1006_v55 = vld [vmem:[%s1367_s1 + $0x1c8] sm:$0xff]  ;;  %v1030_v59 = vld [vmem:[%s1367_s1 + $0x1b8] sm:$0xff] }
  0x13   :  { %670 = vmatprep.subr.mxu1 %v744_v3  ;;  %599 = vmatpush3.msra.mxu0 %v86_v26  ;;  %v15_v50 = vld [vmem:[%s1366_s0] sm:$0xff]  ;;  %v24_v56 = vld [vmem:[%s1366_s0 + $0x48] sm:$0xff] }
  0x14   :  { %698 = vmatpush1.msra.mxu1 %v880_v27  ;;  %600 = vmatprep.subr.mxu0 %v101_v28  ;;  %v19_v54 = vld [vmem:[%s1366_s0 + $0x20] sm:$0xff] }
  0x15   :  { %671 = vmatprep.subr.mxu1 %v744_v3  ;;  %601 = vmatpush3.msra.mxu0 %v85_v29  ;;  %v1019_v57 = vld [vmem:[%s1367_s1 + $0x1c0] sm:$0xff] }
  0x16   :  { %699 = vmatpush1.msra.mxu1 %v893_v30  ;;  %602 = vmatprep.subr.mxu0 %v100_v31  ;;  %v23_v58 = vld [vmem:[%s1366_s0 + $0x40] sm:$0xff] }
  0x17   :  { %672 = vmatprep.subr.mxu1 %v744_v3  ;;  %603 = vmatpush3.msra.mxu0 %v84_v32 }
  0x18   :  { %700 = vmatpush1.msra.mxu1 %v906_v33  ;;  %604 = vmatprep.subr.mxu0 %v99_v34 }
  0x19   :  { %673 = vmatprep.subr.mxu1 %v744_v3  ;;  %605 = vmatpush3.msra.mxu0 %v83_v35 }
  0x1a   :  { %701 = vmatpush1.msra.mxu1 %v919_v36  ;;  %606 = vmatprep.subr.mxu0 %v98_v37 }
  0x1b   :  { %674 = vmatprep.subr.mxu1 %v744_v3  ;;  %607 = vmatpush3.msra.mxu0 %v82_v38 }
  0x1c   :  { %702 = vmatpush1.msra.mxu1 %v932_v39  ;;  %608 = vmatprep.subr.mxu0 %v97_v40 }
  0x1d   :  { %675 = vmatprep.subr.mxu1 %v744_v3  ;;  %609 = vmatpush3.msra.mxu0 %v81_v41 }
  0x1e   :  { %703 = vmatpush1.msra.mxu1 %v945_v42  ;;  %610 = vmatprep.subr.mxu0 %v96_v43 }
  0x1f   :  { %676 = vmatprep.subr.mxu1 %v744_v3  ;;  %611 = vmatpush3.msra.mxu0 %v80_v44 }
  0x20   :  { %704 = vmatpush1.msra.mxu1 %v958_v45  ;;  %612 = vmatprep.subr.mxu0 %v95_v46 }
  0x21   :  { %677 = vmatprep.subr.mxu1 %v744_v3  ;;  %613 = vmatpush3.msra.mxu0 %v79_v47 }
  0x22   :  { %259 = vmatprep.mubr.f32.mxu0 %v16_v48  ;;  %705 = vmatpush1.msra.mxu1 %v975_v49 }
  0x23   :  { %260 = vmatmul.mubr.f32.vlgmr.msra.gmra.mxu0 %v15_v50  ;;  %340 = vmatprep.subr.mxu0 %v744_v3 }
  0x24   :  { %678 = vmatprep.subr.mxu1 %v744_v3  ;;  %341 = vmatpush1.msra.mxu0 %v777_v2 }
  0x25   :  { %706 = vmatpush2.msra.mxu1 %v984_v51  ;;  %264 = vmatprep.mubr.f32.mxu0 %v20_v52 }
  0x26   :  { %679 = vmatprep.subr.mxu1 %v744_v3  ;;  %342 = vmatprep.subr.mxu0 %v744_v3 }
  0x27   :  { %707 = vmatpush2.msra.mxu1 %v995_v53  ;;  %265 = vmatmul.mubr.f32.gmra.mxu0 %v19_v54 }
  0x28   :  { %680 = vmatprep.subr.mxu1 %v744_v3  ;;  %343 = vmatpush1.msra.mxu0 %v789_v6 }
  0x29   :  { %708 = vmatpush2.msra.mxu1 %v1006_v55  ;;  %344 = vmatprep.subr.mxu0 %v744_v3 }
  0x2a   :  { %681 = vmatprep.subr.mxu1 %v744_v3  ;;  %345 = vmatpush1.msra.mxu0 %v802_v9 }
  0x2b   :  { %269 = vmatprep.mubr.f32.mxu0 %v24_v56 }
  0x2c   :  { %8 = vsyncpa [#allocation3], 0  ;;  %346 = vmatprep.subr.mxu0 %v744_v3  ;;  %709 = vmatpush2.msra.mxu1 %v1019_v57  ;;  %v28_v60 = vld [vmem:[%s1366_s0 + $0x68] sm:$0xff]  ;;  %v1043_v61 = vld [vmem:[%s1367_s1 + $0x1b0] sm:$0xff]  ;;  %vm146_vm0 = vcmask 785408  }
  0x2d   :  { %270 = vmatmul.mubr.f32.gmra.mxu0 %v23_v58  ;;  %682 = vmatprep.subr.mxu1 %v744_v3  ;;  %v27_v62 = vld [vmem:[%s1366_s0 + $0x60] sm:$0xff]  ;;  %v1054_v63 = vld [vmem:[%s1367_s1 + $0x1a8] sm:$0xff]  ;;  %v1078_v4 = vld [vmem:[%s1367_s1 + $0x198] sm:$0xff] }
  0x2e   :  { %347 = vmatpush1.msra.mxu0 %v815_v12  ;;  %710 = vmatpush2.msra.mxu1 %v1030_v59  ;;  %v32_v0 = vld [vmem:[%s1366_s0 + $0x88] sm:$0xff]  ;;  %v1067_v1 = vld [vmem:[%s1367_s1 + $0x1a0] sm:$0xff]  ;;  %v1089_v6 = vld [vmem:[%s1367_s1 + $0x190] sm:$0xff] }
  0x2f   :  { %348 = vmatprep.subr.mxu0 %v744_v3  ;;  %683 = vmatprep.subr.mxu1 %v744_v3  ;;  %v31_v2 = vld [vmem:[%s1366_s0 + $0x80] sm:$0xff]  ;;  %v36_v5 = vld [vmem:[%s1366_s0 + $0xa8] sm:$0xff]  ;;  %v30_v11 = vld [vmem:[%s1366_s0 + $0x78] sm:$0xff] }
  0x30   :  { %274 = vmatprep.mubr.f32.mxu0 %v28_v60  ;;  %349 = vmatpush1.msra.mxu0 %v828_v15  ;;  %v35_v7 = vld [vmem:[%s1366_s0 + $0xa0] sm:$0xff]  ;;  %v1100_v8 = vld [vmem:[%s1367_s1 + $0x188] sm:$0xff]  ;;  %v29_v13 = vld [vmem:[%s1366_s0 + $0x70] sm:$0xff] }
  0x31   :  { %711 = vmatpush2.msra.mxu1 %v1043_v61  ;;  %275 = vmatmul.mubr.f32.gmra.mxu0 %v27_v62  ;;  %v40_v9 = vld [vmem:[%s1366_s0 + $0xc8] sm:$0xff]  ;;  %v1113_v10 = vld [vmem:[%s1367_s1 + $0x180] sm:$0xff]  ;;  %v34_v15 = vld [vmem:[%s1366_s0 + $0x98] sm:$0xff] }
  0x32   :  { %350 = vmatprep.subr.mxu0 %v744_v3  ;;  %684 = vmatprep.subr.mxu1 %v744_v3  ;;  %v39_v12 = vld [vmem:[%s1366_s0 + $0xc0] sm:$0xff]  ;;  %v44_v14 = vld [vmem:[%s1366_s0 + $0xe8] sm:$0xff]  ;;  %v33_v17 = vld [vmem:[%s1366_s0 + $0x90] sm:$0xff] }
  0x33   :  { %351 = vmatpush1.msra.mxu0 %v841_v18  ;;  %712 = vmatpush2.msra.mxu1 %v1054_v63  ;;  %v43_v16 = vld [vmem:[%s1366_s0 + $0xe0] sm:$0xff]  ;;  %v48_v18 = vld [vmem:[%s1366_s0 + $0x108] sm:$0xff]  ;;  %v38_v19 = vld [vmem:[%s1366_s0 + $0xb8] sm:$0xff] }
  0x34   :  { %352 = vmatprep.subr.mxu0 %v744_v3  ;;  %685 = vmatprep.subr.mxu1 %v744_v3  ;;  %v47_v20 = vld [vmem:[%s1366_s0 + $0x100] sm:$0xff]  ;;  %v52_v22 = vld [vmem:[%s1366_s0 + $0x128] sm:$0xff]  ;;  %v42_v23 = vld [vmem:[%s1366_s0 + $0xd8] sm:$0xff] }
  0x35   :  { %279 = vmatprep.mubr.f32.mxu0 %v32_v0  ;;  %353 = vmatpush1.msra.mxu0 %v854_v21  ;;  %v37_v21 = vld [vmem:[%s1366_s0 + $0xb0] sm:$0xff]  ;;  %v56_v26 = vld [vmem:[%s1366_s0 + $0x148] sm:$0xff]  ;;  %v55_v28 = vld [vmem:[%s1366_s0 + $0x140] sm:$0xff] }
  0x36   :  { %713 = vmatpush2.msra.mxu1 %v1067_v1  ;;  %280 = vmatmul.mubr.f32.gmra.mxu0 %v31_v2  ;;  %v41_v25 = vld [vmem:[%s1366_s0 + $0xd0] sm:$0xff]  ;;  %v50_v31 = vld [vmem:[%s1366_s0 + $0x118] sm:$0xff]  ;;  %v59_v32 = vld [vmem:[%s1366_s0 + $0x160] sm:$0xff] }
  0x37   :  { %354 = vmatprep.subr.mxu0 %v744_v3  ;;  %686 = vmatprep.subr.mxu1 %v744_v3  ;;  %v45_v29 = vld [vmem:[%s1366_s0 + $0xf0] sm:$0xff]  ;;  %v64_v34 = vld [vmem:[%s1366_s0 + $0x188] sm:$0xff]  ;;  %v54_v35 = vld [vmem:[%s1366_s0 + $0x138] sm:$0xff] }
  0x38   :  { %355 = vmatpush1.msra.mxu0 %v867_v24  ;;  %714 = vmatpush2.msra.mxu1 %v1078_v4  ;;  %v51_v24 = vld [vmem:[%s1366_s0 + $0x120] sm:$0xff]  ;;  %v53_v37 = vld [vmem:[%s1366_s0 + $0x130] sm:$0xff]  ;;  %v68_v38 = vld [vmem:[%s1366_s0 + $0x1a8] sm:$0xff] }
  0x39   :  { %687 = vmatprep.subr.mxu1 %v744_v3  ;;  %284 = vmatprep.mubr.f32.mxu0 %v36_v5  ;;  %v67_v40 = vld [vmem:[%s1366_s0 + $0x1a0] sm:$0xff]  ;;  %v57_v41 = vld [vmem:[%s1366_s0 + $0x150] sm:$0xff]  ;;  %v62_v43 = vld [vmem:[%s1366_s0 + $0x178] sm:$0xff] }
  0x3a   :  { %356 = vmatprep.subr.mxu0 %v744_v3  ;;  %715 = vmatpush2.msra.mxu1 %v1089_v6  ;;  %v71_v44 = vld [vmem:[%s1366_s0 + $0x1c0] sm:$0xff]  ;;  %v76_v46 = vld [vmem:[%s1366_s0 + $0x1e8] sm:$0xff]  ;;  %v66_v47 = vld [vmem:[%s1366_s0 + $0x198] sm:$0xff] }
  0x3b   :  { %285 = vmatmul.mubr.f32.gmra.mxu0 %v35_v7  ;;  %688 = vmatprep.subr.mxu1 %v744_v3  ;;  %v75_v48 = vld [vmem:[%s1366_s0 + $0x1e0] sm:$0xff]  ;;  %v18_v50 = vld [vmem:[%s1366_s0 + $0x18] sm:$0xff]  ;;  %v17_v52 = vld [vmem:[%s1366_s0 + $0x10] sm:$0xff] }
  0x3c   :  { %357 = vmatpush1.msra.mxu0 %v880_v27  ;;  %716 = vmatpush2.msra.mxu1 %v1100_v8  ;;  %v46_v27 = vld [vmem:[%s1366_s0 + $0xf8] sm:$0xff]  ;;  %v73_v56 = vld [vmem:[%s1366_s0 + $0x1d0] sm:$0xff] }
  0x3d   :  { %358 = vmatprep.subr.mxu0 %v744_v3  ;;  %689 = vmatprep.subr.mxu1 %v744_v3  ;;  %v22_v54 = vld [vmem:[%s1366_s0 + $0x38] sm:$0xff]  ;;  %v77_v60 = vld [vmem:[%s1366_s0 + $0x1f0] sm:$0xff] }
  0x3e   :  { %359 = vmatpush1.msra.mxu0 %v893_v30  ;;  %289 = vmatprep.mubr.f32.mxu0 %v40_v9  ;;  %v60_v30 = vld [vmem:[%s1366_s0 + $0x168] sm:$0xff]  ;;  %v78_v58 = vld [vmem:[%s1366_s0 + $0x1f8] sm:$0xff] }
  0x3f   :  { %360 = vmatprep.subr.mxu0 %v744_v3  ;;  %717 = vmatpush2.msra.mxu1 %v1113_v10 }
  0x40   :  { %569 = vmatprep.mubr.msk.f32.mxu1 %vm146_vm0, %v30_v11  ;;  %290 = vmatmul.mubr.f32.gmra.mxu0 %v39_v12  ;;  %v1339_v11 = vld [vmem:[%s1368_s2] ss:$0 sm:$0xff]  ;;  %s745_s2 = smov [#allocation2]  }
  0x41   :  { %361 = vmatpush1.msra.mxu0 %v906_v33  ;;  %420 = vmatmul.mubr.f32.vlgmr.msra.gmra.mxu1 %v29_v13  ;;  %v49_v33 = vld [vmem:[%s1366_s0 + $0x110] sm:$0xff]  ;;  %s554_s14 = sshll.u32 %s745_s2, 4  ;;  %s555_s14 = int_to_ptr.vmem [resolvable:$true] %s554_s14 }
  0x42   :  { %362 = vmatprep.subr.mxu0 %v744_v3  ;;  %294 = vmatprep.mubr.f32.mxu0 %v44_v14  ;;  %s722_s15 = scalar_lea.vmem %s555_s14, 2048  ;;  %p727_p1 = scmp.lt.s32.totalorder %s555_s14, %s555_s14 }
  0x43   :  { %363 = vmatpush1.msra.mxu0 %v919_v36  ;;  %570 = vmatprep.mubr.msk.f32.mxu1 %vm146_vm0, %v34_v15  ;;  %v63_v36 = vld [vmem:[%s1366_s0 + $0x180] sm:$0xff]  ;;  %p723_p0 = scmp.ne.s32.totalorder %s555_s14, %s722_s15  ;;  %p728_p2 = scmp.lt.s32.totalorder %s722_s15, %s722_s15 }
  0x44   :  { %295 = vmatmul.mubr.f32.gmra.mxu0 %v43_v16  ;;  %364 = vmatprep.subr.mxu0 %v744_v3 }
  0x45   :  { %425 = vmatmul.mubr.f32.gmra.mxu1 %v33_v17  ;;  %365 = vmatpush1.msra.mxu0 %v932_v39  ;;  %v58_v39 = vld [vmem:[%s1366_s0 + $0x158] sm:$0xff]  ;;  %p729_p3 = por %p728_p2, %p727_p1 }
  0x46   :  { %366 = vmatprep.subr.mxu0 %v744_v3  ;;  %299 = vmatprep.mubr.f32.mxu0 %v48_v18 }
  0x47   :  { %367 = vmatpush1.msra.mxu0 %v945_v42  ;;  %571 = vmatprep.mubr.msk.f32.mxu1 %vm146_vm0, %v38_v19  ;;  %v72_v42 = vld [vmem:[%s1366_s0 + $0x1c8] sm:$0xff]  ;;  %p730_p4 = pnand %p729_p3, %p723_p0 }
  0x48   :  { %300 = vmatmul.mubr.f32.gmra.mxu0 %v47_v20  ;;  %368 = vmatprep.subr.mxu0 %v744_v3 }
  0x49   :  { %430 = vmatmul.mubr.f32.gmra.mxu1 %v37_v21  ;;  %369 = vmatpush1.msra.mxu0 %v958_v45  ;;  %v61_v45 = vld [vmem:[%s1366_s0 + $0x170] sm:$0xff] }
  0x4a   :  { %304 = vmatprep.mubr.f32.mxu0 %v52_v22  ;;  %370 = vmatprep.subr.mxu0 %v744_v3 }
  0x4b   :  { %572 = vmatprep.mubr.msk.f32.mxu1 %vm146_vm0, %v42_v23  ;;  %371 = vmatpush1.msra.mxu0 %v975_v49  ;;  %v65_v49 = vld [vmem:[%s1366_s0 + $0x190] sm:$0xff] }
  0x4c   :  { %305 = vmatmul.mubr.f32.gmra.mxu0 %v51_v24  ;;  %380 = vmatprep.subr.mxu0 %v744_v3 }
  0x4d   :  { %435 = vmatmul.mubr.f32.gmra.mxu1 %v41_v25  ;;  %381 = vmatpush2.msra.mxu0 %v984_v51  ;;  %v70_v51 = vld [vmem:[%s1366_s0 + $0x1b8] sm:$0xff] }
  0x4e   :  { %309 = vmatprep.mubr.f32.mxu0 %v56_v26  ;;  %382 = vmatprep.subr.mxu0 %v744_v3 }
  0x4f   :  { %573 = vmatprep.mubr.msk.f32.mxu1 %vm146_vm0, %v46_v27  ;;  %383 = vmatpush2.msra.mxu0 %v995_v53  ;;  %v69_v53 = vld [vmem:[%s1366_s0 + $0x1b0] sm:$0xff] }
  0x50   :  { %310 = vmatmul.mubr.f32.gmra.mxu0 %v55_v28  ;;  %384 = vmatprep.subr.mxu0 %v744_v3 }
  0x51   :  { %440 = vmatmul.mubr.f32.gmra.mxu1 %v45_v29  ;;  %314 = vmatprep.mubr.f32.mxu0 %v60_v30 }
  0x52   :  { %385 = vmatpush2.msra.mxu0 %v1006_v55  ;;  %574 = vmatprep.mubr.msk.f32.mxu1 %vm146_vm0, %v50_v31  ;;  %v74_v55 = vld [vmem:[%s1366_s0 + $0x1d8] sm:$0xff] }
  0x53   :  { %386 = vmatprep.subr.mxu0 %v744_v3 }
  0x54   :  { %315 = vmatmul.mubr.f32.gmra.mxu0 %v59_v32 }
  0x55   :  { %445 = vmatmul.mubr.f32.gmra.mxu1 %v49_v33  ;;  %387 = vmatpush2.msra.mxu0 %v1019_v57  ;;  %v26_v57 = vld [vmem:[%s1366_s0 + $0x58] sm:$0xff] }
  0x56   :  { %388 = vmatprep.subr.mxu0 %v744_v3  ;;  %319 = vmatprep.mubr.f32.mxu0 %v64_v34 }
  0x57   :  { %389 = vmatpush2.msra.mxu0 %v1030_v59  ;;  %575 = vmatprep.mubr.msk.f32.mxu1 %vm146_vm0, %v54_v35  ;;  %v25_v59 = vld [vmem:[%s1366_s0 + $0x50] sm:$0xff] }
  0x58   :  { %320 = vmatmul.mubr.f32.gmra.mxu0 %v63_v36  ;;  %390 = vmatprep.subr.mxu0 %v744_v3 }
  0x59   :  { %450 = vmatmul.mubr.f32.gmra.mxu1 %v53_v37  ;;  %391 = vmatpush2.msra.mxu0 %v1043_v61 }
  0x5a   :  { %324 = vmatprep.mubr.f32.mxu0 %v68_v38  ;;  %392 = vmatprep.subr.mxu0 %v744_v3 }
  0x5b   :  { %576 = vmatprep.mubr.msk.f32.mxu1 %vm146_vm0, %v58_v39  ;;  %393 = vmatpush2.msra.mxu0 %v1054_v63 }
  0x5c   :  { %325 = vmatmul.mubr.f32.gmra.mxu0 %v67_v40  ;;  %394 = vmatprep.subr.mxu0 %v744_v3 }
  0x5d   :  { %455 = vmatmul.mubr.f32.gmra.mxu1 %v57_v41  ;;  %395 = vmatpush2.msra.mxu0 %v1067_v1 }
  0x5e   :  { %329 = vmatprep.mubr.f32.mxu0 %v72_v42  ;;  %396 = vmatprep.subr.mxu0 %v744_v3 }
  0x5f   :  { %577 = vmatprep.mubr.msk.f32.mxu1 %vm146_vm0, %v62_v43  ;;  %397 = vmatpush2.msra.mxu0 %v1078_v4 }
  0x60   :  { %330 = vmatmul.mubr.f32.gmra.mxu0 %v71_v44  ;;  %398 = vmatprep.subr.mxu0 %v744_v3 }
  0x61   :  { %460 = vmatmul.mubr.f32.gmra.mxu1 %v61_v45  ;;  %334 = vmatprep.mubr.f32.mxu0 %v76_v46 }
  0x62   :  { %399 = vmatpush2.msra.mxu0 %v1089_v6  ;;  %578 = vmatprep.mubr.msk.f32.mxu1 %vm146_vm0, %v66_v47 }
  0x63   :  { %400 = vmatprep.subr.mxu0 %v744_v3 }
  0x64   :  { %335 = vmatmul.mubr.f32.gmra.mxu0 %v75_v48 }
  0x65   :  { %465 = vmatmul.mubr.f32.gmra.mxu1 %v65_v49  ;;  %401 = vmatpush2.msra.mxu0 %v1100_v8 }
  0x66   :  { %402 = vmatprep.subr.mxu0 %v744_v3  ;;  %566 = vmatprep.mubr.msk.f32.mxu0 %vm146_vm0, %v18_v50  ;;  %v21_v3 = vld [vmem:[%s1366_s0 + $0x30] sm:$0xff] }
  0x67   :  { %403 = vmatpush2.msra.mxu0 %v1113_v10  ;;  %579 = vmatprep.mubr.msk.f32.mxu1 %vm146_vm0, %v70_v51 }
  0x68   :  { %405 = vmatmul.mubr.f32.vlgmr.msra.gmra.mxu0 %v17_v52 }
  0x69   :  { %470 = vmatmul.mubr.f32.gmra.mxu1 %v69_v53  ;;  %567 = vmatprep.mubr.msk.f32.mxu0 %vm146_vm0, %v22_v54 }
  0x6a   :  { %580 = vmatprep.mubr.msk.f32.mxu1 %vm146_vm0, %v74_v55 }
  0x6c   :  { %410 = vmatmul.mubr.f32.gmra.mxu0 %v21_v3 }
  0x6d   :  { %475 = vmatmul.mubr.f32.gmra.mxu1 %v73_v56  ;;  %568 = vmatprep.mubr.msk.f32.mxu0 %vm146_vm0, %v26_v57 }
  0x6e   :  { %581 = vmatprep.mubr.msk.f32.mxu1 %vm146_vm0, %v78_v58 }
  0x70   :  { %415 = vmatmul.mubr.f32.gmra.mxu0 %v25_v59 }
  0x71   :  { %480 = vmatmul.mubr.f32.gmra.mxu1 %v77_v60 }
  0xe3   :  { %v1324_v61 = vpop.f32.mrf.mxu0 }
  0xe5   :  { %v1326_v62 = vpop.f32.mrf.mxu0 }
  0xe7   :  { %v1328_v63 = vpop.f32.mrf.mxu0 }
  0xe9   :  { %v1330_v0 = vpop.f32.mrf.mxu0 }
  0xed   :  { %v1332_v1 = vpop.f32.mrf.mxu0 }
  0xef   :  { %v1334_v2 = vpop.f32.mrf.mxu0 }
  0xf1   :  { %v623_v4 = vpop.f32.mrf.mxu0 }
  0xf3   :  { %v624_v5 = vpop.f32.mrf.mxu0 }
  0xf4   :  { %v625_v9 = vadd.f32 %v624_v5, %v623_v4 }
  0xf6   :  { %v626_v6 = vpop.f32.mrf.mxu0  ;;  %v277_v14 = vadd.f32 %v625_v9, %v1339_v11 }
  0xf8   :  { %v627_v7 = vpop.f32.mrf.mxu0 }
  0xf9   :  { %v628_v12 = vadd.f32 %v627_v7, %v626_v6 }
  0xfb   :  { %v629_v8 = vpop.f32.mrf.mxu0  ;;  %v282_v22 = vadd.f32 %v628_v12, %v1339_v11 }
  0xfd   :  { %v630_v10 = vpop.f32.mrf.mxu0 }
  0xfe   :  { %v631_v19 = vadd.f32 %v630_v10, %v629_v8 }
 0x100   :  { %v632_v13 = vpop.f32.mrf.mxu0  ;;  %v287_v31 = vadd.f32 %v631_v19, %v1339_v11 }
 0x101   :  { %v421_v15 = vpop.f32.mrf.mxu1 }
 0x102   :  { %v422_v16 = vadd.f32 %v421_v15, %v277_v14  ;;  %v633_v17 = vpop.f32.mrf.mxu0 }
 0x103   :  { %v423_v18 = vpop.f32.mrf.mxu1  ;;  %v634_v28 = vadd.f32 %v633_v17, %v632_v13 }
 0x104   :  { %vm488_vm1 = vcmp.gt.f32.partialorder %v422_v16, 0.0  ;;  %v504_v20 = vmul.f32 0.43, %v422_v16  ;;  %v635_v21 = vpop.f32.mrf.mxu0 }
 0x105   :  { %v426_v23 = vpop.f32.mrf.mxu1  ;;  %v292_v40 = vadd.f32 %v634_v28, %v1339_v11 }
 0x106   :  { %v520_v24 = vsel %vm488_vm1, %v422_v16, %v504_v20  ;;  %v427_v25 = vadd.f32 %v426_v23, %v282_v22  ;;  %v636_v26 = vpop.f32.mrf.mxu0 }
 0x107   :  { %536 = vst [vmem:[#allocation2 + $0x18] sm:$0xff] %v520_v24  ;;  %v428_v27 = vpop.f32.mrf.mxu1  ;;  %v637_v37 = vadd.f32 %v636_v26, %v635_v21 }
 0x108   :  { %vm489_vm2 = vcmp.gt.f32.partialorder %v427_v25, 0.0  ;;  %v505_v29 = vmul.f32 0.43, %v427_v25  ;;  %v638_v30 = vpop.f32.mrf.mxu0 }
 0x109   :  { %v431_v32 = vpop.f32.mrf.mxu1  ;;  %v297_v49 = vadd.f32 %v637_v37, %v1339_v11 }
 0x10a   :  { %v521_v33 = vsel %vm489_vm2, %v427_v25, %v505_v29  ;;  %v432_v34 = vadd.f32 %v431_v32, %v287_v31  ;;  %v639_v35 = vpop.f32.mrf.mxu0 }
 0x10b   :  { %537 = vst [vmem:[#allocation2 + $0x20] sm:$0xff] %v521_v33  ;;  %v433_v36 = vpop.f32.mrf.mxu1  ;;  %v640_v46 = vadd.f32 %v639_v35, %v638_v30  ;;  %v616_v33 = vadd.f32 %v1326_v62, %v1324_v61 }
 0x10c   :  { %vm490_vm3 = vcmp.gt.f32.partialorder %v432_v34, 0.0  ;;  %v506_v38 = vmul.f32 0.43, %v432_v34  ;;  %v641_v39 = vpop.f32.mrf.mxu0 }
 0x10d   :  { %v436_v41 = vpop.f32.mrf.mxu1  ;;  %v302_v57 = vadd.f32 %v640_v46, %v1339_v11 }
 0x10e   :  { %v522_v42 = vsel %vm490_vm3, %v432_v34, %v506_v38  ;;  %v437_v43 = vadd.f32 %v436_v41, %v292_v40  ;;  %v642_v44 = vpop.f32.mrf.mxu0 }
 0x10f   :  { %538 = vst [vmem:[#allocation2 + $0x28] sm:$0xff] %v522_v42  ;;  %v438_v45 = vpop.f32.mrf.mxu1  ;;  %v643_v55 = vadd.f32 %v642_v44, %v641_v39 }
 0x110   :  { %vm491_vm4 = vcmp.gt.f32.partialorder %v437_v43, 0.0  ;;  %v507_v47 = vmul.f32 0.43, %v437_v43  ;;  %v644_v48 = vpop.f32.mrf.mxu0  ;;  %v262_v45 = vadd.f32 %v616_v33, %v1339_v11 }
 0x111   :  { %v441_v50 = vpop.f32.mrf.mxu1  ;;  %v307_v9 = vadd.f32 %v643_v55, %v1339_v11 }
 0x112   :  { %v523_v51 = vsel %vm491_vm4, %v437_v43, %v507_v47  ;;  %v442_v52 = vadd.f32 %v441_v50, %v297_v49  ;;  %v645_v53 = vpop.f32.mrf.mxu0  ;;  %v619_v43 = vadd.f32 %v1330_v0, %v1328_v63 }
 0x113   :  { %539 = vst [vmem:[#allocation2 + $0x30] sm:$0xff] %v523_v51  ;;  %v443_v54 = vpop.f32.mrf.mxu1  ;;  %v646_v6 = vadd.f32 %v645_v53, %v644_v48  ;;  %v622_v53 = vadd.f32 %v1334_v2, %v1332_v1 }
 0x114   :  { %vm492_vm5 = vcmp.gt.f32.partialorder %v442_v52, 0.0  ;;  %v508_v3 = vmul.f32 0.43, %v442_v52  ;;  %v647_v56 = vpop.f32.mrf.mxu0  ;;  %v267_v54 = vadd.f32 %v619_v43, %v1339_v11 }
 0x115   :  { %v446_v58 = vpop.f32.mrf.mxu1  ;;  %v312_v19 = vadd.f32 %v646_v6, %v1339_v11 }
 0x116   :  { %v524_v59 = vsel %vm492_vm5, %v442_v52, %v508_v3  ;;  %v447_v60 = vadd.f32 %v446_v58, %v302_v57  ;;  %v648_v4 = vpop.f32.mrf.mxu0 }
 0x117   :  { %540 = vst [vmem:[#allocation2 + $0x38] sm:$0xff] %v524_v59  ;;  %v448_v5 = vpop.f32.mrf.mxu1  ;;  %v649_v16 = vadd.f32 %v648_v4, %v647_v56 }
 0x118   :  { %vm493_vm6 = vcmp.gt.f32.partialorder %v447_v60, 0.0  ;;  %v509_v7 = vmul.f32 0.43, %v447_v60  ;;  %v650_v8 = vpop.f32.mrf.mxu0 }
 0x119   :  { %v451_v10 = vpop.f32.mrf.mxu1  ;;  %v317_v28 = vadd.f32 %v649_v16, %v1339_v11 }
 0x11a   :  { %v525_v12 = vsel %vm493_vm6, %v447_v60, %v509_v7  ;;  %v452_v13 = vadd.f32 %v451_v10, %v307_v9  ;;  %v651_v14 = vpop.f32.mrf.mxu0  ;;  %v272_v7 = vadd.f32 %v622_v53, %v1339_v11 }
 0x11b   :  { %541 = vst [vmem:[#allocation2 + $0x40] sm:$0xff] %v525_v12  ;;  %v453_v15 = vpop.f32.mrf.mxu1  ;;  %v652_v25 = vadd.f32 %v651_v14, %v650_v8 }
 0x11c   :  { %vm494_vm7 = vcmp.gt.f32.partialorder %v452_v13, 0.0  ;;  %v510_v17 = vmul.f32 0.43, %v452_v13  ;;  %v653_v18 = vpop.f32.mrf.mxu0 }
 0x11d   :  { %v456_v20 = vpop.f32.mrf.mxu1  ;;  %v322_v38 = vadd.f32 %v652_v25, %v1339_v11 }
 0x11e   :  { %v526_v21 = vsel %vm494_vm7, %v452_v13, %v510_v17  ;;  %v457_v22 = vadd.f32 %v456_v20, %v312_v19  ;;  %v654_v23 = vpop.f32.mrf.mxu0 }
 0x11f   :  { %542 = vst [vmem:[#allocation2 + $0x48] sm:$0xff] %v526_v21  ;;  %v458_v24 = vpop.f32.mrf.mxu1  ;;  %v655_v35 = vadd.f32 %v654_v23, %v653_v18 }
 0x120   :  { %vm495_vm8 = vcmp.gt.f32.partialorder %v457_v22, 0.0  ;;  %v511_v26 = vmul.f32 0.43, %v457_v22  ;;  %v656_v27 = vpop.f32.mrf.mxu0 }
 0x121   :  { %v461_v29 = vpop.f32.mrf.mxu1  ;;  %v327_v47 = vadd.f32 %v655_v35, %v1339_v11 }
 0x122   :  { %v527_v30 = vsel %vm495_vm8, %v457_v22, %v511_v26  ;;  %v462_v31 = vadd.f32 %v461_v29, %v317_v28  ;;  %v657_v32 = vpop.f32.mrf.mxu0 }
 0x123   :  { %543 = vst [vmem:[#allocation2 + $0x50] sm:$0xff] %v527_v30  ;;  %v463_v34 = vpop.f32.mrf.mxu1  ;;  %v658_v61 = vadd.f32 %v657_v32, %v656_v27 }
 0x124   :  { %vm496_vm9 = vcmp.gt.f32.partialorder %v462_v31, 0.0  ;;  %v512_v36 = vmul.f32 0.43, %v462_v31  ;;  %v659_v37 = vpop.f32.mrf.mxu0 }
 0x125   :  { %v466_v39 = vpop.f32.mrf.mxu1  ;;  %v332_v57 = vadd.f32 %v658_v61, %v1339_v11 }
 0x126   :  { %v528_v40 = vsel %vm496_vm9, %v462_v31, %v512_v36  ;;  %v467_v41 = vadd.f32 %v466_v39, %v322_v38  ;;  %v660_v42 = vpop.f32.mrf.mxu0 }
 0x127   :  { %544 = vst [vmem:[#allocation2 + $0x58] sm:$0xff] %v528_v40  ;;  %v468_v44 = vpop.f32.mrf.mxu1  ;;  %v661_v55 = vadd.f32 %v660_v42, %v659_v37 }
 0x128   :  { %vm497_vm10 = vcmp.gt.f32.partialorder %v467_v41, 0.0  ;;  %v513_v62 = vmul.f32 0.43, %v467_v41  ;;  %v406_v46 = vpop.f32.mrf.mxu0 }
 0x129   :  { %v407_v48 = vadd.f32 %v406_v46, %v262_v45  ;;  %v471_v49 = vpop.f32.mrf.mxu1  ;;  %v337_v10 = vadd.f32 %v661_v55, %v1339_v11 }
 0x12a   :  { %v529_v50 = vsel %vm497_vm10, %v467_v41, %v513_v62  ;;  %v472_v51 = vadd.f32 %v471_v49, %v327_v47  ;;  %v408_v52 = vpop.f32.mrf.mxu0 }
 0x12b   :  { %545 = vst [vmem:[#allocation2 + $0x60] sm:$0xff] %v529_v50  ;;  %vm485_vm11 = vcmp.gt.f32.partialorder %v407_v48, 0.0  ;;  %v501_v63 = vmul.f32 0.43, %v407_v48  ;;  %v473_v0 = vpop.f32.mrf.mxu1 }
 0x12c   :  { %vm498_vm12 = vcmp.gt.f32.partialorder %v472_v51, 0.0  ;;  %v514_v3 = vmul.f32 0.43, %v472_v51  ;;  %v411_v56 = vpop.f32.mrf.mxu0 }
 0x12d   :  { %v517_v58 = vsel %vm485_vm11, %v407_v48, %v501_v63  ;;  %v412_v59 = vadd.f32 %v411_v56, %v267_v54  ;;  %v476_v60 = vpop.f32.mrf.mxu1 }
 0x12e   :  { %533 = vst [vmem:[#allocation2] sm:$0xff] %v517_v58  ;;  %v530_v4 = vsel %vm498_vm12, %v472_v51, %v514_v3  ;;  %v477_v5 = vadd.f32 %v476_v60, %v332_v57  ;;  %v413_v6 = vpop.f32.mrf.mxu0 }
 0x12f   :  { %546 = vst [vmem:[#allocation2 + $0x68] sm:$0xff] %v530_v4  ;;  %vm486_vm13 = vcmp.gt.f32.partialorder %v412_v59, 0.0  ;;  %v502_v1 = vmul.f32 0.43, %v412_v59  ;;  %v478_v2 = vpop.f32.mrf.mxu1 }
 0x130   :  { %vm499_vm14 = vcmp.gt.f32.partialorder %v477_v5, 0.0  ;;  %v515_v8 = vmul.f32 0.43, %v477_v5  ;;  %v416_v9 = vpop.f32.mrf.mxu0 }
 0x131   :  { %v518_v12 = vsel %vm486_vm13, %v412_v59, %v502_v1  ;;  %v417_v13 = vadd.f32 %v416_v9, %v272_v7  ;;  %v481_v14 = vpop.f32.mrf.mxu1 }
 0x132   :  { %534 = vst [vmem:[#allocation2 + $0x8] sm:$0xff] %v518_v12  ;;  %v531_v15 = vsel %vm499_vm14, %v477_v5, %v515_v8  ;;  %v482_v16 = vadd.f32 %v481_v14, %v337_v10  ;;  %v418_v17 = vpop.f32.mrf.mxu0 }
 0x133   :  { %547 = vst [vmem:[#allocation2 + $0x70] sm:$0xff] %v531_v15  ;;  %vm487_vm15 = vcmp.gt.f32.partialorder %v417_v13, 0.0  ;;  %v503_v18 = vmul.f32 0.43, %v417_v13  ;;  %v483_v19 = vpop.f32.mrf.mxu1 }
 0x134   :  { %vm500_vm0 = vcmp.gt.f32.partialorder %v482_v16, 0.0  ;;  %v516_v20 = vmul.f32 0.43, %v482_v16 }
 0x135   :  { %v519_v21 = vsel %vm487_vm15, %v417_v13, %v503_v18 }
 0x136   :  { %535 = vst [vmem:[#allocation2 + $0x10] sm:$0xff] %v519_v21  ;;  %v532_v22 = vsel %vm500_vm0, %v482_v16, %v516_v20 }
 0x137   :  { %548 = vst [vmem:[#allocation2 + $0x78] sm:$0xff] %v532_v22 }
 0x138   :  { %733 = shalt.err (!%p730_p4)
}
 0x139   :  { %s746_s16 = smov 128   ;;  %s747_s17 = smov 8  }
 0x13a   :  { %560 = dma.vmem_to_hbm [thread:$0]  %s555_s14, 2048, %s1369_s3, [#allocation3], %s746_s16, %s746_s16, %s747_s17  }
 0x13b   :  { %742 = dma.done.wait [#allocation3], 2048  }
 0x13c   :  { %743 = vsyncadd [#allocation3], 4294965248 }
 0x13d   :  { %564 = vsyncpa [#allocation3], 1 }

</bundles_post_ra>
